<compile_context>
chip_gen: v6e
topology: v6e:2x2x1
jax: 0.10.0
libtpu: 0.0.40
codegen_flags: <defaults>
</compile_context>

<pallas_src>
import functools

import jax
import jax.numpy as jnp
from jax.experimental import pallas as pl
from jax.experimental.pallas import tpu as pltpu

# ~4 MiB of logits per grid step: large enough to amortize the ~0.35 us/step
# grid overhead (mem-bound regime), small enough that double-buffered blocks
# fit comfortably in VMEM on v5e/v6e/v7x.
_DEFAULT_BLOCK_BYTES = 4 << 20
_VMEM_LIMIT_BYTES = 48 << 20


def _ce_partial_kernel(logits_ref, tgt_ref, out_ref, acc_ref, *,
                       pix_per_image, tile, mask_last_tile):
    """Raw NLL partial sum for one (shard, image-block), tiled over pixels.

    logits_ref: (BI, C, TILE) float  -- class logits (NCHW pixel order)
    tgt_ref:    (BI, 1, TILE) int32  -- integer class targets
    out_ref:    (8, 128)      f32    -- un-normalized NLL sum, broadcast to a vreg
    acc_ref:    (BI, 1, TILE) f32    -- running per-lane NLL partial sums
    """
    t = pl.program_id(2)
    last_t = pl.num_programs(2) - 1

    @pl.when(t == 0)
    def _():
        acc_ref[...] = jnp.zeros_like(acc_ref)

    x = logits_ref[...].astype(jnp.float32)          # (BI, C, TILE)
    tgt = tgt_ref[...]                               # (BI, 1, TILE)

    # Numerically-stable log-softmax across classes (short sublane axis).
    m = jnp.max(x, axis=1, keepdims=True)                                # (BI, 1, TILE)
    lse = m + jnp.log(jnp.sum(jnp.exp(x - m), axis=1, keepdims=True))    # (BI, 1, TILE)

    # Target-class logit via one-hot select (no dynamic gather on TPU).
    cls = jax.lax.broadcasted_iota(jnp.int32, x.shape, 1)                # (BI, C, TILE)
    picked = jnp.sum(jnp.where(cls == tgt, x, 0.0), axis=1, keepdims=True)

    nll = lse - picked                                                   # (BI, 1, TILE)

    if mask_last_tile:
        # Padding lanes only exist in the final pixel tile; gate the
        # iota/compare/select there instead of paying it every step.
        @pl.when(t < last_t)
        def _():
            acc_ref[...] = acc_ref[...] + nll

        @pl.when(t == last_t)
        def _():
            pix = t * tile + jax.lax.broadcasted_iota(jnp.int32, nll.shape, 2)
            acc_ref[...] = acc_ref[...] + jnp.where(pix < pix_per_image, nll, 0.0)
    else:
        acc_ref[...] = acc_ref[...] + nll

    # End of this (shard, image-block): single cross-lane reduce.
    @pl.when(t == last_t)
    def _():
        blk_sum = jnp.sum(acc_ref[...])
        out_ref[...] = jnp.broadcast_to(blk_sum, out_ref.shape).astype(out_ref.dtype)


def criterion_data_parallel1_forward(logits, targets, num_shards=None, *,
                                     block_bytes=_DEFAULT_BLOCK_BYTES):
    """JAX/Pallas equivalent of CriterionDataParallel1.forward.

    Preferred (zero-copy) calling convention:
        logits:  full batch NCHW [N, C, H, W] float (f32 or bf16)
        targets: full batch      [N, H, W]    int
        num_shards: D ("device" count); shards are contiguous dim-0 chunks.
    Also accepts lists/tuples of per-shard arrays (mirrors the torch module),
    at the cost of one concat copy.

    Returns: scalar f32 = mean over shards of per-shard mean cross-entropy
             (== gather(per-shard losses, dim=0).mean()).
    """
    if isinstance(logits, (list, tuple)):
        D = len(logits)
        assert len(targets) == D
        assert all(l.shape == logits[0].shape for l in logits)
        assert all(t.shape == targets[0].shape for t in targets)
        # NOTE: concatenating a Python list costs one extra HBM pass; prefer
        # passing the full batch + num_shards.
        logits_full = jnp.concatenate([jnp.asarray(l) for l in logits], axis=0)
        targets_full = jnp.concatenate([jnp.asarray(t) for t in targets], axis=0)
    else:
        D = int(num_shards) if num_shards is not None else 1
        logits_full = jnp.asarray(logits)
        targets_full = jnp.asarray(targets)

    N, C, H, W = logits_full.shape
    assert N % D == 0, "unequal last shard not supported"
    n = N // D
    P = H * W

    # Zero-copy views: NCHW is already [*, C, pixels]-contiguous.
    logits4 = logits_full.reshape(D, n, C, P)
    targets4 = targets_full.astype(jnp.int32).reshape(D, n, 1, P)

    # ---- block / tile selection ------------------------------------------
    itemsize = jnp.dtype(logits4.dtype).itemsize
    cap_pixels = max(128, ((block_bytes // (C * itemsize)) // 128) * 128)

    if P <= cap_pixels:
        # Whole image(s) per grid step (full-extent pixel block, so no 128
        # divisibility requirement and no mask); pack several images per
        # block to keep per-step DMA bytes large when images are small.
        tile = P
        n_tiles = 1
        mask_last_tile = False
        bi_want = max(1, min(n, cap_pixels // max(P, 1)))
        BI = next(b for b in range(bi_want, 0, -1) if n % b == 0)
    else:
        # Large images: one image per block, big multiple-of-128 pixel tiles.
        BI = 1
        tile = cap_pixels
        n_tiles = -(-P // tile)
        mask_last_tile = (P % tile != 0)   # Pallas edge block, masked in-kernel

    NIB = n // BI
    grid = (D, NIB, n_tiles)

    kernel = functools.partial(
        _ce_partial_kernel,
        pix_per_image=P,
        tile=tile,
        mask_last_tile=mask_last_tile,
    )

    out = pl.pallas_call(
        kernel,
        out_shape=jax.ShapeDtypeStruct((D, NIB, 8, 128), jnp.float32),
        grid_spec=pltpu.PrefetchScalarGridSpec(
            num_scalar_prefetch=0,
            grid=grid,
            in_specs=[
                pl.BlockSpec((pl.Squeezed(), BI, C, tile),
                             lambda d, i, t: (d, i, 0, t)),
                pl.BlockSpec((pl.Squeezed(), BI, 1, tile),
                             lambda d, i, t: (d, i, 0, t)),
            ],
            out_specs=pl.BlockSpec((pl.Squeezed(), pl.Squeezed(), 8, 128),
                                   lambda d, i, t: (d, i, 0, 0)),
            scratch_shapes=[pltpu.VMEM((BI, 1, tile), jnp.float32)],
        ),
        compiler_params=pltpu.CompilerParams(
            # shard and image-block axes are independent -> both "parallel"
            # (splits across both TensorCores on v7x even when D == 1);
            # the pixel-tile axis is the per-block reduction -> "arbitrary".
            dimension_semantics=("parallel", "parallel", "arbitrary"),
            vmem_limit_bytes=_VMEM_LIMIT_BYTES,
        ),
    )(logits4, targets4)

    partial_sums = out[:, :, 0, 0]                               # (D, NIB)
    shard_losses = jnp.sum(partial_sums, axis=1) / float(n * P)  # "gather" of per-device losses
    return jnp.mean(shard_losses)                                # .mean()


def _reference(logits_shards, target_shards):
    """Pure-JAX reference: per-shard mean CE, gathered, then .mean()."""
    losses = []
    for l, t in zip(logits_shards, target_shards):
        x = jnp.transpose(l, (0, 2, 3, 1)).reshape(-1, l.shape[1]).astype(jnp.float32)
        tg = t.reshape(-1)
        logp = jax.nn.log_softmax(x, axis=-1)
        nll = -jnp.take_along_axis(logp, tg[:, None], axis=-1)[:, 0]
        losses.append(jnp.mean(nll))
    return jnp.mean(jnp.stack(losses))


def _shard(x, d):
    c = x.shape[0] // d
    return [x[i * c:(i + 1) * c] for i in range(d)]


if __name__ == "__main__":
    key = jax.random.PRNGKey(0)
    k1, k2, k3, k4, k5, k6 = jax.random.split(key, 6)
    NUM_DEVICES = 2

    # --- Case 1: spec-sized smoke test (full-batch zero-copy path) ---------
    N, C, H, W = 2, 4, 16, 16
    lg = jax.random.normal(k1, (N, C, H, W), dtype=jnp.float32)
    tg = jax.random.randint(k2, (N, H, W), 0, C, dtype=jnp.int32)
    loss = jax.block_until_ready(
        criterion_data_parallel1_forward(lg, tg, num_shards=NUM_DEVICES))
    ref = _reference(_shard(lg, NUM_DEVICES), _shard(tg, NUM_DEVICES))
    assert jnp.allclose(loss, ref, rtol=1e-5, atol=1e-5), (loss, ref)

    # --- Case 2: non-dividing pixel axis (edge block + masked last tile) ---
    N, C, H, W = 2, 4, 18, 18      # P = 324, forced tile = 128 -> 3 tiles, masked
    lg = jax.random.normal(k3, (N, C, H, W), dtype=jnp.float32)
    tg = jax.random.randint(k4, (N, H, W), 0, C, dtype=jnp.int32)
    loss = jax.block_until_ready(
        criterion_data_parallel1_forward(lg, tg, num_shards=NUM_DEVICES,
                                         block_bytes=128 * C * 4))
    ref = _reference(_shard(lg, NUM_DEVICES), _shard(tg, NUM_DEVICES))
    assert jnp.allclose(loss, ref, rtol=1e-5, atol=1e-5), (loss, ref)

    # --- Case 3: multiple images per block + list-of-shards input path -----
    N, C, H, W = 4, 4, 18, 18      # n = 2 per shard, forced BI = 2
    lg = jax.random.normal(k5, (N, C, H, W), dtype=jnp.float32)
    tg = jax.random.randint(k6, (N, H, W), 0, C, dtype=jnp.int32)
    lgs, tgs = _shard(lg, NUM_DEVICES), _shard(tg, NUM_DEVICES)
    loss = jax.block_until_ready(
        criterion_data_parallel1_forward(lgs, tgs, block_bytes=16384))
    ref = _reference(lgs, tgs)
    assert jnp.allclose(loss, ref, rtol=1e-5, atol=1e-5), (loss, ref)

    print("KERNEL_OK")
</pallas_src>

<mosaic_0001>
module attributes {stable_mosaic.version = 11 : i64} {
  func.func @_ce_partial_kernel(%arg0: i32, %arg1: i32, %arg2: i32, %arg3: memref<1x1x4x256xf32, #tpu.memory_space<vmem>>, %arg4: memref<1x1x1x256xi32, #tpu.memory_space<vmem>>, %arg5: memref<1x1x8x128xf32, #tpu.memory_space<vmem>>, %arg6: memref<1x1x256xf32, #tpu.memory_space<vmem>>) attributes {dimension_semantics = [#tpu.dimension_semantics<parallel>, #tpu.dimension_semantics<parallel>, #tpu.dimension_semantics<arbitrary>], iteration_bounds = array<i64: 2, 1, 1>, scalar_prefetch = 0 : i64, scratch_operands = 1 : i64, tpu.core_type = #tpu.core_type<tc>, window_params = [{transform_indices = @transform_0, window_bounds = array<i64: 1, 1, 4, 256>}, {transform_indices = @transform_1, window_bounds = array<i64: 1, 1, 1, 256>}, {transform_indices = @transform_2, window_bounds = array<i64: 1, 1, 8, 128>}]} {
    %c0_i32 = arith.constant 0 : i32
    %0 = arith.cmpi eq, %arg2, %c0_i32 : i32
    %1 = arith.extui %0 : i1 to i32
    %c0_i32_0 = arith.constant 0 : i32
    %2 = arith.cmpi ne, %1, %c0_i32_0 : i32
    scf.if %2 {
      %cst_19 = arith.constant 0.000000e+00 : f32
      %30 = vector.broadcast %cst_19 : f32 to vector<1x1x256xf32>
      %c0_20 = arith.constant 0 : index
      %c0_21 = arith.constant 0 : index
      %c0_22 = arith.constant 0 : index
      %31 = vector.load %arg6[%c0_20, %c0_21, %c0_22] : memref<1x1x256xf32, #tpu.memory_space<vmem>>, vector<1x1x256xf32>
      tpu.vector_store %arg6[%c0_20, %c0_21, %c0_22], %30 {strides = array<i32>} : memref<1x1x256xf32, #tpu.memory_space<vmem>>, vector<1x1x256xf32>,
    } else {
    }
    %c0 = arith.constant 0 : index
    %c0_1 = arith.constant 0 : index
    %c0_2 = arith.constant 0 : index
    %c0_3 = arith.constant 0 : index
    %3 = vector.load %arg3[%c0, %c0_1, %c0_2, %c0_3] : memref<1x1x4x256xf32, #tpu.memory_space<vmem>>, vector<1x1x4x256xf32>
    %4 = vector.shape_cast %3 : vector<1x1x4x256xf32> to vector<1x4x256xf32>
    %c0_4 = arith.constant 0 : index
    %c0_5 = arith.constant 0 : index
    %c0_6 = arith.constant 0 : index
    %c0_7 = arith.constant 0 : index
    %5 = vector.load %arg4[%c0_4, %c0_5, %c0_6, %c0_7] : memref<1x1x1x256xi32, #tpu.memory_space<vmem>>, vector<1x1x1x256xi32>
    %6 = vector.shape_cast %5 : vector<1x1x1x256xi32> to vector<1x1x256xi32>
    %cst = arith.constant dense<0xFF800000> : vector<1x256xf32>
    %7 = vector.multi_reduction <maximumf>, %4, %cst [1] : vector<1x4x256xf32> to vector<1x256xf32>
    %8 = vector.shape_cast %7 : vector<1x256xf32> to vector<1x1x256xf32>
    %9 = vector.broadcast %8 : vector<1x1x256xf32> to vector<1x4x256xf32>
    %10 = arith.subf %4, %9 : vector<1x4x256xf32>
    %11 = math.exp %10 : vector<1x4x256xf32>
    %cst_8 = arith.constant dense<0.000000e+00> : vector<1x256xf32>
    %12 = vector.multi_reduction <add>, %11, %cst_8 [1] : vector<1x4x256xf32> to vector<1x256xf32>
    %13 = vector.shape_cast %12 : vector<1x256xf32> to vector<1x1x256xf32>
    %14 = math.log %13 : vector<1x1x256xf32>
    %15 = arith.addf %8, %14 : vector<1x1x256xf32>
    %16 = tpu.iota {dimensions = array<i32: 1>} : vector<1x4x256xi32>
    %17 = vector.broadcast %6 : vector<1x1x256xi32> to vector<1x4x256xi32>
    %18 = arith.cmpi eq, %16, %17 : vector<1x4x256xi32>
    %cst_9 = arith.constant 0.000000e+00 : f32
    %19 = vector.broadcast %cst_9 : f32 to vector<1x4x256xf32>
    %20 = arith.select %18, %4, %19 : vector<1x4x256xi1>, vector<1x4x256xf32>
    %cst_10 = arith.constant dense<0.000000e+00> : vector<1x256xf32>
    %21 = vector.multi_reduction <add>, %20, %cst_10 [1] : vector<1x4x256xf32> to vector<1x256xf32>
    %22 = vector.shape_cast %21 : vector<1x256xf32> to vector<1x1x256xf32>
    %23 = arith.subf %15, %22 : vector<1x1x256xf32>
    %c0_11 = arith.constant 0 : index
    %c0_12 = arith.constant 0 : index
    %c0_13 = arith.constant 0 : index
    %24 = vector.load %arg6[%c0_11, %c0_12, %c0_13] : memref<1x1x256xf32, #tpu.memory_space<vmem>>, vector<1x1x256xf32>
    %25 = arith.addf %24, %23 : vector<1x1x256xf32>
    %c0_14 = arith.constant 0 : index
    %c0_15 = arith.constant 0 : index
    %c0_16 = arith.constant 0 : index
    %26 = vector.load %arg6[%c0_14, %c0_15, %c0_16] : memref<1x1x256xf32, #tpu.memory_space<vmem>>, vector<1x1x256xf32>
    tpu.vector_store %arg6[%c0_14, %c0_15, %c0_16], %25 {strides = array<i32>} : memref<1x1x256xf32, #tpu.memory_space<vmem>>, vector<1x1x256xf32>,
    %c0_i32_17 = arith.constant 0 : i32
    %27 = arith.cmpi eq, %arg2, %c0_i32_17 : i32
    %28 = arith.extui %27 : i1 to i32
    %c0_i32_18 = arith.constant 0 : i32
    %29 = arith.cmpi ne, %28, %c0_i32_18 : i32
    scf.if %29 {
      %c0_19 = arith.constant 0 : index
      %c0_20 = arith.constant 0 : index
      %c0_21 = arith.constant 0 : index
      %30 = vector.load %arg6[%c0_19, %c0_20, %c0_21] : memref<1x1x256xf32, #tpu.memory_space<vmem>>, vector<1x1x256xf32>
      %31 = vector.shape_cast %30 : vector<1x1x256xf32> to vector<1x1x1x256xf32>
      %cst_22 = arith.constant dense<0.000000e+00> : vector<1xf32>
      %32 = vector.multi_reduction <add>, %31, %cst_22 [1, 2, 3] : vector<1x1x1x256xf32> to vector<1xf32>
      %33 = vector.shape_cast %32 : vector<1xf32> to vector<1x1x1x1xf32>
      %34 = vector.extract %33[0, 0, 0, 0] : f32 from vector<1x1x1x1xf32>
      %35 = vector.broadcast %34 : f32 to vector<8x128xf32>
      %c0_23 = arith.constant 0 : index
      %c0_24 = arith.constant 0 : index
      %c0_25 = arith.constant 0 : index
      %c0_26 = arith.constant 0 : index
      %36 = vector.load %arg5[%c0_23, %c0_24, %c0_25, %c0_26] : memref<1x1x8x128xf32, #tpu.memory_space<vmem>>, vector<1x1x8x128xf32>
      %37 = vector.shape_cast %36 : vector<1x1x8x128xf32> to vector<8x128xf32>
      %38 = vector.shape_cast %35 : vector<8x128xf32> to vector<1x1x8x128xf32>
      tpu.vector_store %arg5[%c0_23, %c0_24, %c0_25, %c0_26], %38 {strides = array<i32>} : memref<1x1x8x128xf32, #tpu.memory_space<vmem>>, vector<1x1x8x128xf32>,
    } else {
    }
    return
  }
  func.func @transform_0(%arg0: i32, %arg1: i32, %arg2: i32) -> (i32, i32, i32, i32) {
    %c0_i32 = arith.constant 0 : i32
    %c0_i32_0 = arith.constant 0 : i32
    return %arg0, %arg1, %c0_i32, %arg2 : i32, i32, i32, i32
  }
  func.func @transform_1(%arg0: i32, %arg1: i32, %arg2: i32) -> (i32, i32, i32, i32) {
    %c0_i32 = arith.constant 0 : i32
    %c0_i32_0 = arith.constant 0 : i32
    return %arg0, %arg1, %c0_i32, %arg2 : i32, i32, i32, i32
  }
  func.func @transform_2(%arg0: i32, %arg1: i32, %arg2: i32) -> (i32, i32, i32, i32) {
    %c0_i32 = arith.constant 0 : i32
    %c0_i32_0 = arith.constant 0 : i32
    %c0_i32_1 = arith.constant 0 : i32
    return %arg0, %arg1, %c0_i32, %c0_i32_0 : i32, i32, i32, i32
  }
}

</mosaic_0001>

<bundles_post_ra>
// kernel: tpu_custom_call.1
= control target key start
LH: loop header
LB: loop body
LE: loop exit
PB: predicated region body
PF: predicated region fallthrough
CT: control target
= control target key end

     0   :  { %7 = vsyncpa [#allocation4], 0  ;;  %s966_s0 = inlined_call_operand.hbm [shape: f32[2,1,4,256], index: 0, kind: input, shape index: {}]   ;;  %s967_s1 = inlined_call_operand.hbm [shape: s32[2,1,1,256], index: 1, kind: input, shape index: {}]   ;;  %s968_s2 = inlined_call_operand.hbm [shape: f32[2,1,8,128], index: 2, kind: output, shape index: {}]  }
   0x1   :  { %9 = vsyncpa [#allocation4 + $0x1], 0 }
   0x2   :  { %10 = vsyncpa [#allocation7], 0 }
   0x3   :  { %12 = vsyncpa [#allocation7 + $0x1], 0 }
   0x4   :  { %13 = vsyncpa [#allocation5], 0 }
   0x5   :  { %15 = vsyncpa [#allocation5 + $0x1], 0  ;;  %s771_s9 = smov 0   ;;  %s773_s10 = smov 0  }
   0x6   :  { %s775_s11 = smov 0   ;;  %s777_s12 = smov 0  }
   0x7   :  { %s779_s13 = smov 0   ;;  %s781_s14 = smov 0  }
   0x8 LB: > { %s511_s15 = sadd.s32 4294967295, %s749_s14   ;;  %s512_s16 = sadd.s32 4294967294, %s749_s14   ;;  %s749_s14 = sphi %s781_s14, %s21_s14   ;;  %s745_s13 = sphi %s779_s13, %s982_s13   ;;  %s741_s12 = sphi %s777_s12, %s981_s12   ;;  %s737_s11 = sphi %s775_s11, %s980_s11   ;;  %s733_s10 = sphi %s773_s10, %s979_s10   ;;  %s729_s9 = sphi %s771_s9, %s978_s9  }
   0x9   : > { %s40_s17 = sadd.s32 1, %s745_s13  ;;  %s51_s18 = sadd.s32 1, %s737_s11 }
   0xa   : > { %p42_p0 = scmp.ge.s32.totalorder %s40_s17, 2  ;;  %p58_p1 = scmp.ne.s32.totalorder %s737_s11, %s733_s10 }
   0xb   : > { %p59_p2 = scmp.eq.s32.totalorder %s749_s14, 0  ;;  %p64_p3 = scmp.ne.s32.totalorder %s733_s10, %s729_s9 }
   0xc   : > { %s984_s17 = smov (%p42_p0, %s40_s17), 0  ;;  %p65_p5 = scmp.eq.s32.totalorder %s511_s15, 0 }
   0xd   : > { %p812_p4 = por %p59_p2, %p58_p1  ;;  %s44_s20 = ssub.s32 %s745_s13, %s984_s17 }
   0xe   : > { %p120_p6 = scmp.eq.s32.totalorder %s511_s15, 1  ;;  %p49_p7 = scmp.eq.s32.totalorder %s44_s20, 0 }
   0xf   : > { %p818_p8 = por %p65_p5, %p64_p3  ;;  %p126_p10 = scmp.eq.s32.totalorder %s512_s16, 1 }
  0x10   : > { %p822_p9 = por %p120_p6, %p58_p1  ;;  %p550_p13 = scmp.lt.s32.totalorder %s749_s14, 2 }
  0x11   : > { %s827_s23 = scalar_select %p49_p7, %s737_s11, %s51_s18  }
  0x12   : > { %p829_p11 = por %p126_p10, %p64_p3  ;;  %s836_s25 = sand.u32 1, %s737_s11  }
  0x13   : > { %s515_s26 = sshll.u32 %s836_s25, 3  ;;  %s529_s27 = sshll.u32 %s745_s13, 7 }
  0x14   : > { %s160_s30 = scalar_lea.hbm %s966_s0, %s529_s27  ;;  %s150_s3 = scalar_lea.vmem [#allocation3], %s515_s26 }
  0x15   : > { %s162_s4 = sshll.u32 %s150_s3, 4  ;;  %p845_p0 = pnand %p550_p13, %p812_p4  ;;  %s163_s4 = int_to_ptr.vmem [resolvable:$true] %s162_s4 }
  0x16   : > { %p521_p1 = scmp.ge.s32.totalorder %s749_s14, 1  ;;  %p190_p2 = scmp.lt.s32.totalorder %s749_s14, 3 }
  0x17   : > { %s147_s6 = scalar_lea.sflag [#allocation4], %s836_s25  ;;  %p611_p3 = pneg %p845_p0 }
  0x18   : > { %s622_s7 = scalar_lea.vmem %s163_s4, 128  ;;  %s751_s8 = smov [#allocation3]  }
  0x19   : > { %p623_p5 = scmp.ne.s32.totalorder %s163_s4, %s622_s7  ;;  %s627_s15 = sshll.u32 %s751_s8, 4  ;;  %s628_s15 = int_to_ptr.vmem [resolvable:$false] %s627_s15 }
  0x1a   : > { %s629_s16 = scalar_lea.vmem %s628_s15, 256  ;;  %p630_p4 = scmp.lt.s32.totalorder %s163_s4, %s628_s15 }
  0x1b   : > { %p625_p6 = pnand %p623_p5, %p611_p3  ;;  %p631_p10 = scmp.lt.s32.totalorder %s629_s16, %s622_s7 }
  0x1d   : > { %p626_p7 = pneg %p625_p6  ;;  %p632_p13 = por %p631_p10, %p630_p4 }
  0x1f   : > { %p633_p12 = pnand %p632_p13, %p626_p7 }
  0x21   : > { %636 = shalt.err (!%p633_p12)
}
  0x22   : > { %542 = dma.hbm_to_vmem [thread:$0]  (!%p845_p0), %s160_s30, 128, %s163_s4, %s147_s6  }
  0x23   : > { %p863_p5 = pnand %p521_p1, %p190_p2  ;;  %s518_s19 = sshll.u32 %s836_s25, 1 }
  0x24   : > { %s530_s20 = sshll.u32 %s745_s13, 5  ;;  %s173_s29 = scalar_lea.vmem [#allocation6], %s518_s19 }
  0x25   : > { %s183_s28 = scalar_lea.hbm %s967_s1, %s530_s20  ;;  %s185_s3 = sshll.u32 %s173_s29, 4  ;;  %s186_s3 = int_to_ptr.vmem [resolvable:$true] %s185_s3 }
  0x26   : > { %s170_s7 = scalar_lea.sflag [#allocation7], %s836_s25  ;;  %s650_s8 = scalar_lea.vmem %s186_s3, 32 }
  0x27   : > { %p651_p12 = scmp.ne.s32.totalorder %s186_s3, %s650_s8  ;;  %s752_s30 = smov [#allocation6]  }
  0x28   : > { %s655_s4 = sshll.u32 %s752_s30, 4  ;;  %s656_s4 = int_to_ptr.vmem [resolvable:$false] %s655_s4 }
  0x29   : > { %p653_p6 = pnand %p651_p12, %p611_p3  ;;  %s657_s6 = scalar_lea.vmem %s656_s4, 64 }
  0x2a   : > { %p658_p1 = scmp.lt.s32.totalorder %s186_s3, %s656_s4  ;;  %p659_p2 = scmp.lt.s32.totalorder %s657_s6, %s650_s8 }
  0x2b   : > { %p654_p7 = pneg %p653_p6 }
  0x2c   : > { %p660_p4 = por %p659_p2, %p658_p1 }
  0x2e   : > { %p661_p10 = pnand %p660_p4, %p654_p7 }
  0x30   : > { %664 = shalt.err (!%p661_p10)
}
  0x31   : > { %545 = dma.hbm_to_vmem [thread:$0]  (!%p845_p0), %s183_s28, 32, %s186_s3, %s170_s7  }
  0x32   : > { %194 = sbr.rel (%p863_p5) target bundleno = 365 (0x16d), region = 28  ;;  %s881_s25 = sand.u32 (!%p863_p5), 1, %s733_s10  }
  0x33   : > { %s522_s15 = sshll.u32 (!%p863_p5), %s881_s25, 3  ;;  %s197_s16 = scalar_lea.sflag (!%p863_p5), [#allocation4], %s881_s25 }
  0x34   : > { %s200_s19 = scalar_lea.vmem (!%p863_p5), [#allocation3], %s522_s15 }
  0x37   : > { %716 = dma.done.wait (%p818_p8), %s197_s16, 128  }
  0x38   : > { %718 = vsyncadd (%p818_p8), %s197_s16, 4294967168  ;;  %s523_s5 = sshll.u32 %s881_s25, 1  ;;  %s206_s18 = scalar_lea.sflag [#allocation7], %s881_s25 }
  0x39   : > { %s209_s20 = scalar_lea.vmem [#allocation6], %s523_s5 }
  0x3a   : > { %720 = dma.done.wait (%p818_p8), %s206_s18, 32  }
  0x3b   : > { %722 = vsyncadd (%p818_p8), %s206_s18, 4294967264  ;;  %v241_v0 = vlaneseq  ;;  %v753_v2 = vmov 0.0   ;;  %vm251_vm1 = vcmask 1043456   ;;  %v246_v3 = vld [vmem:[%s200_s19] sm:$0xff]  ;;  %v247_v24 = vld [vmem:[%s209_s20] sm:$0x3] }
  0x3c   : > { %v249_v4 = vcombine.high %v246_v3, %v246_v3  ;;  %v252_v5 = vsel %vm251_vm1, %v246_v3, -inf  ;;  %v754_v58 = vmov 1966171168   ;;  %vm366_vm4 = vcmask 1040384   ;;  %s234_s21 = scalar_lea.vmem [#allocation8], %s522_s15  ;;  %s526_s27 = sshll.u32 %s741_s12, 7 }
  0x3d   : > { %vm897_vm0 = vcmp.lt.s32.totalorder %v241_v0, 256  ;;  %v253_v6 = vrot.slane %v252_v5, 4  ;;  %v905_v22 = vshrl.u32 %v241_v0, 7  ;;  %v331_v59 = vunpack.c.l.s4 %v754_v58  ;;  %s396_s26 = sshll.u32 %s234_s21, 4  ;;  %s394_s7 = scalar_lea.hbm %s968_s2, %s526_s27  ;;  %s921_s26 = int_to_ptr.vmem [resolvable:$true] %s396_s26 }
  0x3e   : > { %245 = vst.msk [vmem:[#allocation2] sm:$0x3] %vm897_vm0, %v753_v2  ;;  %v259_v7 = vsel %vm251_vm1, %v249_v4, -inf  ;;  %s382_s8 = scalar_lea.sflag [#allocation5], %s881_s25  ;;  %s665_s30 = scalar_lea.vmem %s921_s26, 128 }
  0x3f   : > { %v254_v8 = vmax.f32 %v252_v5, %v253_v6  ;;  %v260_v9 = vrot.slane %v259_v7, 4  ;;  %v300_v23 = vsub.s32 0, %v905_v22  ;;  %v304_v25 = vsub.s32 1, %v905_v22  ;;  %p666_p8 = scmp.ne.s32.totalorder %s921_s26, %s665_s30  ;;  %s755_s4 = smov [#allocation8]  }
  0x40   : > { %s669_s12 = sshll.u32 %s755_s4, 4  ;;  %s670_s12 = int_to_ptr.vmem [resolvable:$false] %s669_s12 }
  0x41   : > { %v255_v10 = vrot.slane %v254_v8, 2  ;;  %v261_v11 = vmax.f32 %v259_v7, %v260_v9  ;;  %v301_v26 = vrot.slane %v247_v24, %v300_v23  ;;  %v305_v27 = vrot.slane %v247_v24, %v304_v25  ;;  %p667_p0 = pnand %p666_p8, %p822_p9  ;;  %s671_s6 = scalar_lea.vmem %s670_s12, 256 }
  0x42   : > { %p672_p13 = scmp.lt.s32.totalorder %s921_s26, %s670_s12  ;;  %p673_p5 = scmp.lt.s32.totalorder %s671_s6, %s665_s30 }
  0x43   : > { %v256_v12 = vmax.f32 %v254_v8, %v255_v10  ;;  %v262_v13 = vrot.slane %v261_v11, 2  ;;  %vm306_vm2 = vcmp.eq.s32.totalorder %v905_v22, %v301_v26  ;;  %vm307_vm3 = vcmp.eq.s32.totalorder %v905_v22, %v305_v27  ;;  %p668_p3 = pneg %p667_p0 }
  0x44   : > { %v308_v32 = vsel %vm306_vm2, %v246_v3, 0.0  ;;  %v309_v36 = vsel %vm307_vm3, %v249_v4, 0.0  ;;  %v332_v4 = vunpack.c.0.s8 %v331_v59  ;;  %p674_p12 = por %p673_p5, %p672_p13 }
  0x45   : > { %v257_v14 = vrot.slane %v256_v12, 1  ;;  %v263_v15 = vmax.f32 %v261_v11, %v262_v13  ;;  %v310_v37 = vsel %vm251_vm1, %v308_v32, 0.0  ;;  %v317_v40 = vsel %vm251_vm1, %v309_v36, 0.0  ;;  %v326_v11 = vld [vmem:[#allocation2] sm:$0x3] }
  0x46   : > { %v311_v43 = vrot.slane %v310_v37, 4  ;;  %v318_v46 = vrot.slane %v317_v40, 4  ;;  %v335_v8 = vsub.s32 %v332_v4, %v905_v22  ;;  %p675_p6 = pnand %p674_p12, %p668_p3 }
  0x47   : > { %v258_v16 = vmax.f32 %v256_v12, %v257_v14  ;;  %v264_v17 = vrot.slane %v263_v15, 1 }
  0x48   : > { %v312_v49 = vadd.f32 %v311_v43, %v310_v37  ;;  %v319_v51 = vadd.f32 %v318_v46, %v317_v40 }
  0x49   : > { %v265_v18 = vmax.f32 %v263_v15, %v264_v17 }
  0x4a   : > { %v313_v52 = vrot.slane %v312_v49, 2  ;;  %v320_v53 = vrot.slane %v319_v51, 2 }
  0x4b   : > { %v268_v19 = vcombine.low %v258_v16, %v265_v18 }
  0x4c   : > { %v314_v54 = vadd.f32 %v313_v52, %v312_v49  ;;  %v321_v55 = vadd.f32 %v320_v53, %v319_v51 }
  0x4d   : > { %v270_v20 = vsub.f32 %v246_v3, %v268_v19 }
  0x4e   : > { %v315_v56 = vrot.slane %v314_v54, 1  ;;  %v322_v57 = vrot.slane %v321_v55, 1 }
  0x4f   : > { %v271_v21 = vmul.f32 1.442695, %v270_v20 }
  0x50   : > { %v316_v62 = vadd.f32 %v315_v56, %v314_v54  ;;  %v323_v3 = vadd.f32 %v322_v57, %v321_v55 }
  0x51   : > { %603 = vpow2.f32 %v271_v21 }
  0x5e   : > { %v604_v28 = vpop.eup %603 }
  0x5f   : > { %v274_v29 = vcombine.high %v604_v28, %v604_v28  ;;  %v276_v30 = vsel %vm251_vm1, %v604_v28, 0.0 }
  0x60   : > { %v277_v31 = vrot.slane %v276_v30, 4 }
  0x61   : > { %v283_v33 = vsel %vm251_vm1, %v274_v29, 0.0 }
  0x62   : > { %v278_v34 = vadd.f32 %v277_v31, %v276_v30  ;;  %v284_v35 = vrot.slane %v283_v33, 4 }
  0x64   : > { %v279_v38 = vrot.slane %v278_v34, 2  ;;  %v285_v39 = vadd.f32 %v284_v35, %v283_v33 }
  0x66   : > { %v280_v41 = vadd.f32 %v279_v38, %v278_v34  ;;  %v286_v42 = vrot.slane %v285_v39, 2 }
  0x68   : > { %v281_v44 = vrot.slane %v280_v41, 1  ;;  %v287_v45 = vadd.f32 %v286_v42, %v285_v39 }
  0x6a   : > { %v282_v47 = vadd.f32 %v281_v44, %v280_v41  ;;  %v288_v48 = vrot.slane %v287_v45, 1 }
  0x6c   : > { %v289_v50 = vadd.f32 %v288_v48, %v287_v45  ;;  %605 = vlog2.f32 %v282_v47 }
  0x6e   : > { %607 = vlog2.f32 %v289_v50 }
  0x79   : > { %v606_v60 = vpop.eup %605 }
  0x7a   : > { %v291_v61 = vmul.f32 0.6931472, %v606_v60 }
  0x7b   : > { %v608_v63 = vpop.eup %607 }
  0x7c   : > { %v293_v0 = vmul.f32 0.6931472, %v608_v63  ;;  %v294_v2 = vadd.f32 %v291_v61, %v258_v16 }
  0x7e   : > { %v295_v5 = vadd.f32 %v293_v0, %v265_v18  ;;  %v324_v6 = vsub.f32 %v294_v2, %v316_v62 }
  0x80   : > { %v325_v7 = vsub.f32 %v295_v5, %v323_v3 }
  0x82   : > { %v329_v9 = vcombine.low %v324_v6, %v325_v7 }
  0x84   : > { %v336_v10 = vrot.slane %v329_v9, %v335_v8 }
  0x86   : > { %v343_v12 = vrot.slane %v336_v10, %v335_v8 }
  0x88   : > { %v345_v13 = vadd.f32 %v343_v12, %v326_v11 }
  0x8a   : > { %350 = vst.msk [vmem:[#allocation2] sm:$0x3] %vm897_vm0, %v345_v13 }
  0x91   : > { %v354_v14 = vld [vmem:[#allocation2] sm:$0x3] }
  0x92   : > { %v359_v15 = vrot.slane %v354_v14, %v300_v23  ;;  %v363_v16 = vrot.slane %v354_v14, %v304_v25 }
  0x94   : > { %v367_v17 = vsel %vm366_vm4, %v359_v15, 0.0  ;;  %v368_v18 = vsel %vm366_vm4, %v363_v16, 0.0 }
  0x95   : > { %v369_v19 = vadd.f32 %v368_v18, %v367_v17 }
  0x97   : > { %370 = vadd.xlane.f32.xlu0 %v369_v19 }
 0x120   : > { %v371_v20 = vpop.xlane.xlu0 %370 }
 0x121   : > { %v372_v21 = vrot.slane %v371_v20, 4 }
 0x123   : > { %v373_v22 = vadd.f32 %v372_v21, %v371_v20 }
 0x125   : > { %v374_v24 = vrot.slane %v373_v22, 2 }
 0x127   : > { %v375_v26 = vadd.f32 %v374_v24, %v373_v22 }
 0x129   : > { %v376_v27 = vrot.slane %v375_v26, 1 }
 0x12b   : > { %v377_v1 = vadd.f32 %v376_v27, %v375_v26 }
 0x12d   : > { %531 = vpush %v377_v1 }
 0x15e   : > { %s532_s28 = spop %531 }
 0x15f   : > { %v379_v23 = vstv %s532_s28 }
 0x160   : > { %380 = vst [vmem:[%s234_s21] sm:$0xff] %v379_v23 }
 0x161   : > { %678 = shalt.err (!%p675_p6)
}
 0x162   : > { %s679_s15 = scalar_lea.hbm %s394_s7, 128  ;;  %s683_s19 = scalar_lea.hbm %s968_s2, 256 }
 0x163   : > { %p680_p7 = scmp.ne.s32.totalorder %s394_s7, %s679_s15  ;;  %p684_p4 = scmp.lt.s32.totalorder %s394_s7, %s968_s2 }
 0x164   : > { %p685_p10 = scmp.lt.s32.totalorder %s683_s19, %s679_s15 }
 0x165   : > { %p681_p1 = pnand %p680_p7, %p822_p9 }
 0x166   : > { %p686_p8 = por %p685_p10, %p684_p4 }
 0x167   : > { %p682_p2 = pneg %p681_p1 }
 0x169   : > { %p687_p0 = pnand %p686_p8, %p682_p2 }
 0x16b   : > { %690 = shalt.err (!%p687_p0)
}
 0x16c   : > { %537 = dma.vmem_to_hbm [thread:$0]  (%p822_p9), %s921_s26, 128, %s394_s7, %s382_s8  }
 0x16d PF: > { %s408_s20 = sand.u32 1, %s729_s9   ;;  %p977_p3 = scmp.ge.s32.totalorder %s749_s14, 2 }
 0x16e   : > { %s409_s21 = scalar_lea.sflag [#allocation5], %s408_s20 }
 0x16f   : > { %p547_p13 = pnand %p977_p3, %p829_p11 }
 0x171   : > { %p548_p5 = pneg %p547_p13 }
 0x173   : > { %724 = dma.done.wait (%p548_p5), %s409_s21, 128  }
 0x174   : > { %726 = vsyncadd (%p548_p5), %s409_s21, 4294967168  ;;  %s21_s14 = sadd.s32 1, %s749_s14   ;;  %s978_s9 = smov %s733_s10 }
 0x175   : > { %p18_p12 = scmp.ge.s32.totalorder %s21_s14, 4   ;;  %s979_s10 = smov %s737_s11 }
 0x176   : > { %s980_s11 = smov %s827_s23  ;;  %s981_s12 = smov %s745_s13 }
 0x177   : > { %s982_s13 = smov %s984_s17  ;;  %20 = sbr.rel (!%p18_p12) target bundleno = 8 (0x8), region = 94 }
 0x17c   :  { %414 = vsyncpa [#allocation4], 1 }
 0x17d   :  { %416 = vsyncpa [#allocation4 + $0x1], 1 }
 0x17e   :  { %417 = vsyncpa [#allocation7], 1 }
 0x17f   :  { %419 = vsyncpa [#allocation7 + $0x1], 1 }
 0x180   :  { %420 = vsyncpa [#allocation5], 1 }
 0x181   :  { %422 = vsyncpa [#allocation5 + $0x1], 1 }

</bundles_post_ra>
